<compile_context>
chip_gen: v5e
topology: v5e:2x2
jax: 0.10.0
libtpu: 0.0.40
codegen_flags: <defaults>
</compile_context>

<pallas_src>
import functools

import jax
import jax.numpy as jnp
from jax.experimental import pallas as pl
from jax.experimental.pallas import tpu as pltpu


def _round_up(x: int, m: int) -> int:
    return (x + m - 1) // m * m


def _chip_defaults():
    """(num_splits, vmem_limit_bytes) per TPU generation."""
    kind = ""
    try:
        kind = jax.devices()[0].device_kind.lower()
    except Exception:
        pass
    if "v7" in kind:
        # 2 TensorCores per chip, but only 64 MiB VMEM per TC.
        return 2, 48 * 1024 * 1024
    # v5e / v6e: single TC, 128 MiB physical VMEM -> raise the scoped limit.
    return 1, 64 * 1024 * 1024


def _distill_kl_kernel(ys_ref, yt_ref, out_ref, acc_ref, *,
                       inv_t: float, scale: float,
                       batch: int, tile_b: int, tiles_per_split: int,
                       need_row_mask: bool, approx_recip: bool):
    i = pl.program_id(1)

    @pl.when(i == 0)
    def _init():
        acc_ref[...] = jnp.zeros_like(acc_ref)

    # logits / T as a compile-time constant multiply (no per-element divide)
    ys = ys_ref[...].astype(jnp.float32) * inv_t
    yt = yt_ref[...].astype(jnp.float32) * inv_t

    # numerically stable softmax pieces for student and teacher
    ys_sh = ys - jnp.max(ys, axis=1, keepdims=True)
    yt_sh = yt - jnp.max(yt, axis=1, keepdims=True)
    yt_exp = jnp.exp(yt_sh)                                   # [tb, C]
    yt_sum = jnp.sum(yt_exp, axis=1, keepdims=True)           # [tb, 1]
    ys_sum = jnp.sum(jnp.exp(ys_sh), axis=1, keepdims=True)   # [tb, 1]

    # per-row KL:
    #   sum_c p_t * (log p_t - log p_s)
    #     = recip * sum_c yt_exp * (yt_sh - ys_sh) + log(ys_sum * recip)
    # with recip = 1 / yt_sum computed once on the EUP and reused twice.
    recip = pl.reciprocal(yt_sum, approx=approx_recip)         # [tb, 1]
    kl_rows = (recip * jnp.sum(yt_exp * (yt_sh - ys_sh), axis=1, keepdims=True)
               + jnp.log(ys_sum * recip))                      # [tb, 1]

    if need_row_mask:
        # Partial last tile / overshoot tiles: select (not multiply) so any
        # NaN/Inf produced from unspecified out-of-bounds rows is discarded.
        g = pl.program_id(0) * tiles_per_split + i             # global tile idx
        rows_left = batch - g * tile_b                         # may be <= 0
        row = jax.lax.broadcasted_iota(jnp.int32, kl_rows.shape, 0)
        kl_rows = jnp.where(row < rows_left, kl_rows, 0.0)

    # per-row f32 accumulator; one VALU add per row per tile
    acc_ref[...] += kl_rows

    @pl.when(i == pl.num_programs(1) - 1)
    def _finalize():
        total = jnp.sum(acc_ref[...]) * scale
        out_ref[...] = jnp.full(out_ref.shape, total, dtype=jnp.float32)


def distill_kl(y_s: jax.Array, y_t: jax.Array, T: float, *,
               tile_b: int | None = None,
               num_splits: int | None = None,
               vmem_limit_bytes: int | None = None,
               approx_recip: bool = True) -> jax.Array:
    """KD loss = KL(softmax(y_t/T) || softmax(y_s/T)) * T^2 / batch (PyTorch DistillKL).

    Inputs are read exactly as given (no wrapper cast, no wrapper pad): the
    kernel reads each element once from HBM and accumulates in f32.
    """
    assert y_s.shape == y_t.shape and y_s.ndim == 2
    assert y_s.dtype == y_t.dtype
    B, C = y_s.shape
    in_bytes = jnp.dtype(y_s.dtype).itemsize

    auto_splits, auto_vmem = _chip_defaults()
    if num_splits is None:
        num_splits = auto_splits
    if vmem_limit_bytes is None:
        vmem_limit_bytes = auto_vmem

    # sublane multiple for the batch tile (16 covers packed bf16 rows)
    sub = 16 if in_bytes < 4 else 8

    # Honest VMEM budget: double-buffered inputs (2 bufs x 2 inputs x in_bytes)
    # plus ~5 f32 [tile_b, C] intermediates, with headroom for the compiler.
    budget = max(vmem_limit_bytes - (4 << 20), 2 << 20)
    per_row = (4 * in_bytes + 20) * C
    auto_rows = int(max(sub, min(1024, budget // per_row)))
    tile_b = auto_rows if tile_b is None else min(int(tile_b), auto_rows)

    if tile_b >= B:
        tile_b = B                         # full-dim block: legal for any B
        total_tiles = 1
    else:
        tile_b = max(sub, tile_b // sub * sub)
        total_tiles = pl.cdiv(B, tile_b)

    # v7x: rather than idling a core, shrink the tile so both cores get work.
    if num_splits > 1 and total_tiles < num_splits and B > num_splits * sub:
        tile_b = _round_up(pl.cdiv(B, num_splits), sub)
        total_tiles = pl.cdiv(B, tile_b)

    num_splits = max(1, min(num_splits, total_tiles))
    tiles_per_split = pl.cdiv(total_tiles, num_splits)
    # mask rows whenever grid coverage (splits * tiles * tile_b) != B
    need_row_mask = (num_splits * tiles_per_split * tile_b != B)

    def in_idx(p, i):
        g = p * tiles_per_split + i
        # Overshoot tiles (uneven split) re-read the last valid block; their
        # rows are masked to 0 inside the kernel.
        return (jnp.minimum(g, total_tiles - 1), 0)

    in_spec = pl.BlockSpec((tile_b, C), in_idx)
    # one lane-dense (8,128) output block per parallel split; summed in wrapper
    out_spec = pl.BlockSpec((8, 128), lambda p, i: (p, 0))

    kernel = functools.partial(
        _distill_kl_kernel,
        inv_t=float(1.0 / T),
        scale=float(T) * float(T) / float(B),   # T^2 / batch size
        batch=B, tile_b=tile_b, tiles_per_split=tiles_per_split,
        need_row_mask=need_row_mask, approx_recip=approx_recip)

    cost = pl.CostEstimate(
        flops=int(12 * B * C),
        transcendentals=int(2 * B * C + 4 * B),
        bytes_accessed=int(2 * B * C * in_bytes + num_splits * 8 * 128 * 4))

    partials = pl.pallas_call(
        kernel,
        out_shape=jax.ShapeDtypeStruct((num_splits * 8, 128), jnp.float32),
        grid_spec=pltpu.PrefetchScalarGridSpec(
            num_scalar_prefetch=0,
            grid=(num_splits, tiles_per_split),
            in_specs=[in_spec, in_spec],
            out_specs=out_spec,
            scratch_shapes=[pltpu.VMEM((tile_b, 1), jnp.float32)]),
        compiler_params=pltpu.CompilerParams(
            dimension_semantics=("parallel", "arbitrary"),
            vmem_limit_bytes=int(vmem_limit_bytes)),
        cost_estimate=cost,
    )(y_s, y_t)

    return jnp.sum(partials.reshape(num_splits, 8, 128)[:, 0, 0])


def _reference(y_s, y_t, T):
    # Pure-JAX reference of the PyTorch forward (for verification).
    p_s = jax.nn.log_softmax(y_s / T, axis=1)
    p_t = jax.nn.softmax(y_t / T, axis=1)
    log_p_t = jax.nn.log_softmax(y_t / T, axis=1)
    kl = jnp.sum(p_t * (log_p_t - p_s))
    return kl * (T ** 2) / y_s.shape[0]


if __name__ == "__main__":
    key = jax.random.PRNGKey(0)
    k1, k2, k3, k4 = jax.random.split(key, 4)
    T = 4.0

    # --- strict check: f32 inputs, exact reciprocal, single full-dim tile ---
    B, C = 4, 16
    y_s = jax.random.normal(k1, (B, C), dtype=jnp.float32)
    y_t = jax.random.normal(k2, (B, C), dtype=jnp.float32)
    loss = jax.block_until_ready(distill_kl(y_s, y_t, T, approx_recip=False))
    ref = _reference(y_s, y_t, T)
    assert jnp.allclose(loss, ref, rtol=1e-5, atol=1e-5), (loss, ref)

    # --- tiled path: non-128 C, partial last tile, forced 2-way split (the
    #     overshoot tile is fully row-masked), approx reciprocal ---
    B2, C2 = 20, 200
    y_s2 = jax.random.normal(k3, (B2, C2), dtype=jnp.float32)
    y_t2 = jax.random.normal(k4, (B2, C2), dtype=jnp.float32)
    loss2 = jax.block_until_ready(
        distill_kl(y_s2, y_t2, T, tile_b=8, num_splits=2))
    ref2 = _reference(y_s2, y_t2, T)
    assert jnp.allclose(loss2, ref2, rtol=1e-2, atol=1e-3), (loss2, ref2)

    # --- bf16 logits produced upstream (no wrapper cast; f32 in-kernel) ---
    y_s3 = y_s2.astype(jnp.bfloat16)
    y_t3 = y_t2.astype(jnp.bfloat16)
    loss3 = jax.block_until_ready(distill_kl(y_s3, y_t3, T))
    ref3 = _reference(y_s3.astype(jnp.float32), y_t3.astype(jnp.float32), T)
    assert jnp.allclose(loss3, ref3, rtol=3e-2, atol=1e-3), (loss3, ref3)

    print("KERNEL_OK")
</pallas_src>

<mosaic_0001>
module attributes {stable_mosaic.version = 11 : i64} {
  func.func @_distill_kl_kernel(%arg0: i32, %arg1: i32, %arg2: memref<4x16xf32, #tpu.memory_space<vmem>>, %arg3: memref<4x16xf32, #tpu.memory_space<vmem>>, %arg4: memref<8x128xf32, #tpu.memory_space<vmem>>, %arg5: memref<4x1xf32, #tpu.memory_space<vmem>>) attributes {dimension_semantics = [#tpu.dimension_semantics<parallel>, #tpu.dimension_semantics<arbitrary>], iteration_bounds = array<i64: 1, 1>, scalar_prefetch = 0 : i64, scratch_operands = 1 : i64, tpu.core_type = #tpu.core_type<tc>, window_params = [{transform_indices = @transform_0, window_bounds = array<i64: 4, 16>}, {transform_indices = @transform_1, window_bounds = array<i64: 4, 16>}, {transform_indices = @transform_2, window_bounds = array<i64: 8, 128>}]} {
    %c0_i32 = arith.constant 0 : i32
    %0 = arith.cmpi eq, %arg1, %c0_i32 : i32
    %1 = arith.extui %0 : i1 to i32
    %c0_i32_0 = arith.constant 0 : i32
    %2 = arith.cmpi ne, %1, %c0_i32_0 : i32
    scf.if %2 {
      %cst_16 = arith.constant 0.000000e+00 : f32
      %38 = vector.broadcast %cst_16 : f32 to vector<4x1xf32>
      %c0_17 = arith.constant 0 : index
      %c0_18 = arith.constant 0 : index
      %39 = vector.load %arg5[%c0_17, %c0_18] : memref<4x1xf32, #tpu.memory_space<vmem>>, vector<4x1xf32>
      tpu.vector_store %arg5[%c0_17, %c0_18], %38 {strides = array<i32>} : memref<4x1xf32, #tpu.memory_space<vmem>>, vector<4x1xf32>,
    } else {
    }
    %c0 = arith.constant 0 : index
    %c0_1 = arith.constant 0 : index
    %3 = vector.load %arg2[%c0, %c0_1] : memref<4x16xf32, #tpu.memory_space<vmem>>, vector<4x16xf32>
    %cst = arith.constant 2.500000e-01 : f32
    %4 = vector.broadcast %cst : f32 to vector<4x16xf32>
    %5 = arith.mulf %3, %4 : vector<4x16xf32>
    %c0_2 = arith.constant 0 : index
    %c0_3 = arith.constant 0 : index
    %6 = vector.load %arg3[%c0_2, %c0_3] : memref<4x16xf32, #tpu.memory_space<vmem>>, vector<4x16xf32>
    %cst_4 = arith.constant 2.500000e-01 : f32
    %7 = vector.broadcast %cst_4 : f32 to vector<4x16xf32>
    %8 = arith.mulf %6, %7 : vector<4x16xf32>
    %cst_5 = arith.constant dense<0xFF800000> : vector<4xf32>
    %9 = vector.multi_reduction <maximumf>, %5, %cst_5 [1] : vector<4x16xf32> to vector<4xf32>
    %10 = vector.shape_cast %9 : vector<4xf32> to vector<4x1xf32>
    %11 = vector.broadcast %10 : vector<4x1xf32> to vector<4x16xf32>
    %12 = arith.subf %5, %11 : vector<4x16xf32>
    %cst_6 = arith.constant dense<0xFF800000> : vector<4xf32>
    %13 = vector.multi_reduction <maximumf>, %8, %cst_6 [1] : vector<4x16xf32> to vector<4xf32>
    %14 = vector.shape_cast %13 : vector<4xf32> to vector<4x1xf32>
    %15 = vector.broadcast %14 : vector<4x1xf32> to vector<4x16xf32>
    %16 = arith.subf %8, %15 : vector<4x16xf32>
    %17 = math.exp %16 : vector<4x16xf32>
    %cst_7 = arith.constant dense<0.000000e+00> : vector<4xf32>
    %18 = vector.multi_reduction <add>, %17, %cst_7 [1] : vector<4x16xf32> to vector<4xf32>
    %19 = vector.shape_cast %18 : vector<4xf32> to vector<4x1xf32>
    %20 = math.exp %12 : vector<4x16xf32>
    %cst_8 = arith.constant dense<0.000000e+00> : vector<4xf32>
    %21 = vector.multi_reduction <add>, %20, %cst_8 [1] : vector<4x16xf32> to vector<4xf32>
    %22 = vector.shape_cast %21 : vector<4xf32> to vector<4x1xf32>
    %23 = tpu.reciprocal %19 : vector<4x1xf32> -> vector<4x1xf32>
    %24 = arith.subf %16, %12 : vector<4x16xf32>
    %25 = arith.mulf %17, %24 : vector<4x16xf32>
    %cst_9 = arith.constant dense<0.000000e+00> : vector<4xf32>
    %26 = vector.multi_reduction <add>, %25, %cst_9 [1] : vector<4x16xf32> to vector<4xf32>
    %27 = vector.shape_cast %26 : vector<4xf32> to vector<4x1xf32>
    %28 = arith.mulf %23, %27 : vector<4x1xf32>
    %29 = arith.mulf %22, %23 : vector<4x1xf32>
    %30 = math.log %29 : vector<4x1xf32>
    %31 = arith.addf %28, %30 : vector<4x1xf32>
    %c0_10 = arith.constant 0 : index
    %c0_11 = arith.constant 0 : index
    %32 = vector.load %arg5[%c0_10, %c0_11] : memref<4x1xf32, #tpu.memory_space<vmem>>, vector<4x1xf32>
    %33 = arith.addf %32, %31 : vector<4x1xf32>
    %c0_12 = arith.constant 0 : index
    %c0_13 = arith.constant 0 : index
    %34 = vector.load %arg5[%c0_12, %c0_13] : memref<4x1xf32, #tpu.memory_space<vmem>>, vector<4x1xf32>
    tpu.vector_store %arg5[%c0_12, %c0_13], %33 {strides = array<i32>} : memref<4x1xf32, #tpu.memory_space<vmem>>, vector<4x1xf32>,
    %c0_i32_14 = arith.constant 0 : i32
    %35 = arith.cmpi eq, %arg1, %c0_i32_14 : i32
    %36 = arith.extui %35 : i1 to i32
    %c0_i32_15 = arith.constant 0 : i32
    %37 = arith.cmpi ne, %36, %c0_i32_15 : i32
    scf.if %37 {
      %c0_16 = arith.constant 0 : index
      %c0_17 = arith.constant 0 : index
      %38 = vector.load %arg5[%c0_16, %c0_17] : memref<4x1xf32, #tpu.memory_space<vmem>>, vector<4x1xf32>
      %39 = vector.shape_cast %38 : vector<4x1xf32> to vector<1x4x1xf32>
      %cst_18 = arith.constant dense<0.000000e+00> : vector<1xf32>
      %40 = vector.multi_reduction <add>, %39, %cst_18 [1, 2] : vector<1x4x1xf32> to vector<1xf32>
      %41 = vector.shape_cast %40 : vector<1xf32> to vector<1x1x1xf32>
      %42 = vector.extract %41[0, 0, 0] : f32 from vector<1x1x1xf32>
      %cst_19 = arith.constant 4.000000e+00 : f32
      %43 = arith.mulf %42, %cst_19 : f32
      %44 = vector.broadcast %43 : f32 to vector<8x128xf32>
      %c0_20 = arith.constant 0 : index
      %c0_21 = arith.constant 0 : index
      %45 = vector.load %arg4[%c0_20, %c0_21] : memref<8x128xf32, #tpu.memory_space<vmem>>, vector<8x128xf32>
      tpu.vector_store %arg4[%c0_20, %c0_21], %44 {strides = array<i32>} : memref<8x128xf32, #tpu.memory_space<vmem>>, vector<8x128xf32>,
    } else {
    }
    return
  }
  func.func @transform_0(%arg0: i32, %arg1: i32) -> (i32, i32) {
    %c1_i32 = arith.constant 1 : i32
    %0 = arith.muli %arg0, %c1_i32 : i32
    %1 = arith.addi %0, %arg1 : i32
    %c0_i32 = arith.constant 0 : i32
    %2 = arith.minsi %1, %c0_i32 : i32
    %c0_i32_0 = arith.constant 0 : i32
    %c0_i32_1 = arith.constant 0 : i32
    return %2, %c0_i32_0 : i32, i32
  }
  func.func @transform_1(%arg0: i32, %arg1: i32) -> (i32, i32) {
    %c1_i32 = arith.constant 1 : i32
    %0 = arith.muli %arg0, %c1_i32 : i32
    %1 = arith.addi %0, %arg1 : i32
    %c0_i32 = arith.constant 0 : i32
    %2 = arith.minsi %1, %c0_i32 : i32
    %c0_i32_0 = arith.constant 0 : i32
    %c0_i32_1 = arith.constant 0 : i32
    return %2, %c0_i32_0 : i32, i32
  }
  func.func @transform_2(%arg0: i32, %arg1: i32) -> (i32, i32) {
    %c0_i32 = arith.constant 0 : i32
    %c0_i32_0 = arith.constant 0 : i32
    return %arg0, %c0_i32 : i32, i32
  }
}

</mosaic_0001>

<bundles_post_ra>
// kernel: tpu_custom_call.1
= control target key start
LH: loop header
LB: loop body
LE: loop exit
PB: predicated region body
PF: predicated region fallthrough
CT: control target
= control target key end

     0   :  { %7 = vsyncpa [#allocation4], 0  ;;  %s280_s0 = inlined_call_operand.hbm [shape: f32[4,16], index: 0, kind: input, shape index: {}]   ;;  %s281_s1 = inlined_call_operand.hbm [shape: f32[4,16], index: 1, kind: input, shape index: {}]   ;;  %s282_s2 = inlined_call_operand.hbm [shape: f32[8,128], index: 2, kind: output, shape index: {}]  }
   0x1   :  { %8 = vsyncpa [#allocation7], 0 }
   0x2   :  { %9 = vsyncpa [#allocation5], 0  ;;  %s20_s11 = sshll.u32 %s280_s0, 4  ;;  %s244_s12 = smov [#allocation3]   ;;  %s21_s11 = int_to_ptr.hbm [resolvable:$true] %s20_s11 }
   0x3   :  { %s22_s13 = sshll.u32 %s244_s12, 4  ;;  %s36_s16 = sshll.u32 %s281_s1, 4  ;;  %s23_s13 = int_to_ptr.vmem [resolvable:$true] %s22_s13  ;;  %s37_s16 = int_to_ptr.hbm [resolvable:$true] %s36_s16 }
   0x4   :  { %25 = dma.hbm_to_vmem [thread:$0]  %s21_s11, 64, %s23_s13, [#allocation4]  }
   0x5   :  { %s245_s17 = smov [#allocation6]  }
   0x6   :  { %s38_s18 = sshll.u32 %s245_s17, 4  ;;  %s39_s18 = int_to_ptr.vmem [resolvable:$true] %s38_s18 }
   0x7   :  { %41 = dma.hbm_to_vmem [thread:$0]  %s37_s16, 64, %s39_s18, [#allocation7]  }
   0x8   :  { %238 = dma.done.wait [#allocation4], 64  }
   0x9   :  { %239 = vsyncadd [#allocation4], 4294967232 }
   0xa   :  { %240 = dma.done.wait [#allocation7], 64  }
   0xb   :  { %241 = vsyncadd [#allocation7], 4294967232  ;;  %v64_v0 = vld [vmem:[#allocation6] sm:$0xf]  ;;  %vm66_vm0 = vcmask 125952   ;;  %vm60_vm1 = vcmask 3072  }
   0xc   :  { %v65_v1 = vmul.f32 0.25, %v64_v0  ;;  %v62_v2 = vld [vmem:[#allocation3] sm:$0xf]  ;;  %v246_v19 = vmov 0.0   ;;  %s247_s0 = smov [#allocation8]   ;;  %s137_s21 = sshll.u32 %s282_s2, 4  ;;  %s138_s21 = int_to_ptr.hbm [resolvable:$true] %s137_s21 }
   0xd   :  { %v63_v4 = vmul.f32 0.25, %v62_v2  ;;  %61 = vst.msk [vmem:[#allocation2] sm:$0xf] %vm60_vm1, %v246_v19  ;;  %s135_s1 = sshll.u32 %s247_s0, 4  ;;  %s136_s1 = int_to_ptr.vmem [resolvable:$true] %s135_s1 }
   0xe   :  { %v71_v3 = vsel %vm66_vm0, %v65_v1, -inf }
   0xf   :  { %72 = vmax.xlane.f32.xlu0 %v71_v3  ;;  %v67_v5 = vsel %vm66_vm0, %v63_v4, -inf }
  0x14   :  { %v109_v37 = vld [vmem:[#allocation2] sm:$0xf] }
  0x17   :  { %68 = vmax.xlane.f32.xlu0 %v67_v5 }
  0x82   :  { %v73_v6 = vpop.xlane.xlu0 %72 }
  0x83   :  { %v74_v7 = vsub.f32 %v65_v1, %v73_v6 }
  0x85   :  { %v75_v8 = vmul.f32 1.442695, %v74_v7 }
  0x87   :  { %158 = vpow2.f32 %v75_v8 }
  0x8a   :  { %v69_v9 = vpop.xlane.xlu0 %68 }
  0x8b   :  { %v70_v10 = vsub.f32 %v63_v4, %v69_v9 }
  0x8d   :  { %v159_v11 = vpop.eup %158  ;;  %v80_v12 = vmul.f32 1.442695, %v70_v10  ;;  %v99_v13 = vsub.f32 %v74_v7, %v70_v10 }
  0x8e   :  { %v77_v14 = vsel %vm66_vm0, %v159_v11, 0.0 }
  0x8f   :  { %160 = vpow2.f32 %v80_v12  ;;  %78 = vadd.xlane.f32.xlu1 %v77_v14  ;;  %v100_v15 = vmul.f32 %v159_v11, %v99_v13 }
  0x91   :  { %v101_v16 = vsel %vm66_vm0, %v100_v15, 0.0 }
  0x92   :  { %102 = vadd.xlane.f32.xlu2 %v101_v16 }
  0x95   :  { %v161_v17 = vpop.eup %160 }
  0x96   :  { %v82_v18 = vsel %vm66_vm0, %v161_v17, 0.0 }
  0x97   :  { %83 = vadd.xlane.f32.xlu1 %v82_v18 }
 0x102   :  { %v79_v20 = vpop.xlane.xlu1 %78 }
 0x103   :  { %162 = vrcp.f32 %v79_v20  ;;  %v96_v24 = vand.u32 2147483648, %v79_v20  ;;  %v94_v26 = vand.u32 2147483647, %v79_v20  ;;  %vm90_vm3 = vweird.f32 %v79_v20 }
 0x105   :  { %v97_v28 = vor.u32 1.1754944e-38, %v96_v24  ;;  %vm95_vm5 = vcmp.eq.f32.partialorder %v94_v26, 8.507059e+37  ;;  %v103_v34 = vpop.xlane.xlu2 %102 }
 0x109   :  { %v163_v21 = vpop.eup %162 }
 0x10a   :  { %v86_v22 = vmul.f32 %v163_v21, %v79_v20  ;;  %vm91_vm2 = vweird.f32 %v163_v21  ;;  %v84_v29 = vpop.xlane.xlu1 %83 }
 0x10b   :  { %vm92_vm4 = vmor %vm90_vm3, %vm91_vm2 }
 0x10c   :  { %v87_v23 = vsub.f32 1.0, %v86_v22 }
 0x10e   :  { %v88_v25 = vmul.f32 %v163_v21, %v87_v23 }
 0x110   :  { %v89_v27 = vadd.f32 %v163_v21, %v88_v25 }
 0x112   :  { %v93_v30 = vsel %vm92_vm4, %v163_v21, %v89_v27 }
 0x113   :  { %v98_v31 = vsel %vm95_vm5, %v97_v28, %v93_v30 }
 0x114   :  { %v105_v32 = vmul.f32 %v98_v31, %v84_v29  ;;  %v104_v35 = vmul.f32 %v103_v34, %v98_v31 }
 0x116   :  { %164 = vlog2.f32 %v105_v32 }
 0x11c   :  { %v165_v33 = vpop.eup %164 }
 0x11d   :  { %v107_v36 = vmul.f32 0.6931472, %v165_v33 }
 0x11f   :  { %v108_v38 = vadd.f32 %v107_v36, %v104_v35 }
 0x121   :  { %v110_v39 = vadd.f32 %v109_v37, %v108_v38 }
 0x123   :  { %112 = vst.msk [vmem:[#allocation2] sm:$0xf] %vm60_vm1, %v110_v39 }
 0x12a   :  { %v116_v40 = vld [vmem:[#allocation2] sm:$0xf] }
 0x12b   :  { %v117_v41 = vsel %vm60_vm1, %v116_v40, 0.0 }
 0x12c   :  { %118 = vadd.xlane.f32.xlu2 %v117_v41 }
 0x19f   :  { %v119_v42 = vpop.xlane.xlu2 %118 }
 0x1a0   :  { %v120_v43 = vrot.slane %v119_v42, 4 }
 0x1a2   :  { %v121_v44 = vadd.f32 %v120_v43, %v119_v42 }
 0x1a4   :  { %v122_v45 = vrot.slane %v121_v44, 2 }
 0x1a6   :  { %v123_v46 = vadd.f32 %v122_v45, %v121_v44 }
 0x1a8   :  { %v124_v47 = vrot.slane %v123_v46, 1 }
 0x1aa   :  { %v125_v48 = vadd.f32 %v124_v47, %v123_v46 }
 0x1ac   :  { %152 = vpush %v125_v48 }
 0x1dd   :  { %s153_s22 = spop %152 }
 0x1de   :  { %s127_s23 = smul.f32 4.0, %s153_s22 }
 0x1e0   :  { %v128_v49 = vstv %s127_s23 }
 0x1e1   :  { %129 = vst [vmem:[#allocation8] sm:$0xff] %v128_v49 }
 0x1e2   :  { %140 = dma.vmem_to_hbm [thread:$0]  %s136_s1, 128, %s138_s21, [#allocation5]  }
 0x1e3   :  { %242 = dma.done.wait [#allocation5], 128  }
 0x1e4   :  { %243 = vsyncadd [#allocation5], 4294967168 }
 0x1e5   :  { %145 = vsyncpa [#allocation4], 1 }
 0x1e6   :  { %146 = vsyncpa [#allocation7], 1 }
 0x1e7   :  { %147 = vsyncpa [#allocation5], 1 }

</bundles_post_ra>
